<compile_context>
chip_gen: v7x
topology: tpu7x:2x2x1
jax: 0.10.0
libtpu: 0.0.40
codegen_flags: <defaults>
</compile_context>

<pallas_src>
import jax
import jax.numpy as jnp
from jax.experimental import pallas as pl
from jax.experimental.pallas import tpu as pltpu

ALPHA = 0.2     # LeakyReLU negative slope
H1 = 256
H2 = 128
H3 = 64
OUT = 1


def _leaky_relu(x, alpha):
    return jnp.where(x > 0, x, alpha * x)


def discriminator_kernel(x_ref, w1_ref, b1_ref, w2_ref, b2_ref, w3_ref, b3_ref,
                         w4_ref, b4_ref, out_ref, out1_ref):
    """Fused 4-linear MLP. bf16 MXU operands, f32 accumulation / elementwise."""
    # x arrives as f32; cast to bf16 in-kernel (cheap VPU op, avoids an extra HBM pass).
    x = x_ref[...].astype(jnp.bfloat16)                            # (tb, F) bf16

    # ---- layer_1: Linear(F, 256) + LeakyReLU  (Dropout = identity in eval) ----
    h1 = jnp.dot(x, w1_ref[...], preferred_element_type=jnp.float32)
    h1 = _leaky_relu(h1 + b1_ref[...], ALPHA)                      # (tb, 256) f32
    out1_ref[...] = h1.astype(out1_ref.dtype)                      # second module output

    # ---- layer_2: Linear(256, 128) + LeakyReLU ----
    h2 = jnp.dot(h1.astype(jnp.bfloat16), w2_ref[...],
                 preferred_element_type=jnp.float32)
    h2 = _leaky_relu(h2 + b2_ref[...], ALPHA)                      # (tb, 128) f32

    # ---- layer_3 part 1: Linear(128, 64) + LeakyReLU ----
    h3 = jnp.dot(h2.astype(jnp.bfloat16), w3_ref[...],
                 preferred_element_type=jnp.float32)
    h3 = _leaky_relu(h3 + b3_ref[...], ALPHA)                      # (tb, 64) f32

    # ---- layer_3 part 2: Linear(64, 1) + Sigmoid, lane-dense ----
    # logits[0, b] = sum_k w4[0, k] * h3[b, k]   (contract last dims -> (1, tb))
    logits = jax.lax.dot_general(
        w4_ref[...], h3.astype(jnp.bfloat16),
        (((1,), (1,)), ((), ())),
        preferred_element_type=jnp.float32)                        # (1, tb)
    logits = logits + b4_ref[0, 0]                                 # scalar bias from SMEM
    # sigmoid: exp + approx reciprocal both land on the EUP slot (free vs. VALU).
    prob = pl.reciprocal(1.0 + jnp.exp(-logits), approx=True)
    out_ref[...] = prob.astype(out_ref.dtype)


def discriminator_central(x, params, *, tb=512):
    """x: (B, F) float32.  Returns (output (B,1), output_1 (B,256)), both float32."""
    w1, b1, w2, b2, w3, b3, w4, b4 = params
    B, F = x.shape
    assert F == w1.shape[0], "input feature dim must match layer_1 weight"

    # Effective batch tile: shrink to B for small batches; otherwise require a
    # lane/sublane-friendly tile and pad B up to a multiple of it.
    tb = min(tb, B)
    if B > tb:
        assert tb % 128 == 0, "multi-tile batch requires tb to be a multiple of 128"
    Bp = ((B + tb - 1) // tb) * tb
    if Bp != B:
        x = jnp.pad(x, ((0, Bp - B), (0, 0)))

    # Weights cast to bf16 once in the wrapper (tiny, ~150 KB total) and then held
    # resident in VMEM for every grid step.  x is NOT pre-cast (see kernel comment).
    w1b, w2b, w3b, w4b = (w.astype(jnp.bfloat16) for w in (w1, w2, w3, w4))

    grid = (Bp // tb,)
    full = lambda shape: pl.BlockSpec(shape, lambda i: (0, 0))

    out_row, out1 = pl.pallas_call(
        discriminator_kernel,
        out_shape=(
            jax.ShapeDtypeStruct((1, Bp), jnp.float32),    # sigmoid output, lane-dense
            jax.ShapeDtypeStruct((Bp, H1), jnp.float32),   # layer_1 activations
        ),
        grid_spec=pltpu.PrefetchScalarGridSpec(
            num_scalar_prefetch=0,
            grid=grid,
            in_specs=[
                pl.BlockSpec((tb, F), lambda i: (i, 0)),   # x batch tile (f32)
                full((F, H1)),                             # w1 (in, out) bf16
                full((1, H1)),                             # b1 f32
                full((H1, H2)),                            # w2 bf16
                full((1, H2)),                             # b2 f32
                full((H2, H3)),                            # w3 bf16
                full((1, H3)),                             # b3 f32
                full((1, H3)),                             # w4 (out=1, in=64), PyTorch layout
                pl.BlockSpec(memory_space=pltpu.MemorySpace.SMEM),   # b4 scalar (1,1)
            ],
            out_specs=(
                pl.BlockSpec((1, tb), lambda i: (0, i)),   # lane-dense sigmoid output
                pl.BlockSpec((tb, H1), lambda i: (i, 0)),  # layer_1 output
            ),
        ),
        compiler_params=pltpu.CompilerParams(
            dimension_semantics=("parallel",)),            # shards batch tiles over v7x TCs
    )(x, w1b, b1, w2b, b2, w3b, b3, w4b, b4)

    output = out_row.reshape(Bp, 1)[:B]
    output_1 = out1[:B]
    return output, output_1


def init_params(key, in_dim):
    """Deterministic synthetic params (PyTorch-Linear-like uniform init), f32."""
    ks = jax.random.split(key, 8)

    def lin(kw, kb, fan_in, fan_out, transpose=True):
        bound = 1.0 / jnp.sqrt(fan_in)
        shape = (fan_in, fan_out) if transpose else (fan_out, fan_in)
        w = jax.random.uniform(kw, shape, jnp.float32, -bound, bound)
        b = jax.random.uniform(kb, (1, fan_out), jnp.float32, -bound, bound)
        return w, b

    w1, b1 = lin(ks[0], ks[1], in_dim, H1)
    w2, b2 = lin(ks[2], ks[3], H1, H2)
    w3, b3 = lin(ks[4], ks[5], H2, H3)
    # final head kept in PyTorch (out, in) layout = (1, 64); bias is a (1, 1) scalar.
    w4, b4 = lin(ks[6], ks[7], H3, OUT, transpose=False)
    return (w1, b1, w2, b2, w3, b3, w4, b4)


def reference(x, params):
    """Pure-JAX f32 reference of the PyTorch forward (eval mode)."""
    w1, b1, w2, b2, w3, b3, w4, b4 = params
    h1 = _leaky_relu(x @ w1 + b1, ALPHA)
    h2 = _leaky_relu(h1 @ w2 + b2, ALPHA)
    h3 = _leaky_relu(h2 @ w3 + b3, ALPHA)
    out = jax.nn.sigmoid(h3 @ w4.T + b4)
    return out, h1


if __name__ == "__main__":
    key = jax.random.PRNGKey(0)
    kx, kp = jax.random.split(key)

    n_samples, n_groups = 16, 4            # small, consistent with the module
    in_dim = n_samples * n_groups          # 64
    B = 16

    x = jax.random.normal(kx, (B, in_dim), jnp.float32)
    params = init_params(kp, in_dim)

    out, out1 = discriminator_central(x, params)
    jax.block_until_ready((out, out1))

    ref_out, ref_out1 = reference(x, params)
    assert out.shape == (B, OUT) and out1.shape == (B, H1)
    # bf16 MXU operands + approx reciprocal -> compare against f32 reference loosely.
    assert jnp.allclose(out, ref_out, atol=2e-2), (
        f"output max abs err {jnp.max(jnp.abs(out - ref_out))}")
    assert jnp.allclose(out1, ref_out1, atol=2e-2, rtol=2e-2), (
        f"output_1 max abs err {jnp.max(jnp.abs(out1 - ref_out1))}")

    print("KERNEL_OK")
</pallas_src>

<mosaic_0001>
module attributes {stable_mosaic.version = 11 : i64} {
  func.func @discriminator_kernel(%arg0: i32, %arg1: memref<16x64xf32, #tpu.memory_space<vmem>>, %arg2: memref<64x256xbf16, #tpu.memory_space<vmem>>, %arg3: memref<1x256xf32, #tpu.memory_space<vmem>>, %arg4: memref<256x128xbf16, #tpu.memory_space<vmem>>, %arg5: memref<1x128xf32, #tpu.memory_space<vmem>>, %arg6: memref<128x64xbf16, #tpu.memory_space<vmem>>, %arg7: memref<1x64xf32, #tpu.memory_space<vmem>>, %arg8: memref<1x64xbf16, #tpu.memory_space<vmem>>, %arg9: memref<1x1xf32, #tpu.memory_space<smem>>, %arg10: memref<1x16xf32, #tpu.memory_space<vmem>>, %arg11: memref<16x256xf32, #tpu.memory_space<vmem>>) attributes {dimension_semantics = [#tpu.dimension_semantics<parallel>], iteration_bounds = array<i64: 1>, scalar_prefetch = 0 : i64, scratch_operands = 0 : i64, tpu.core_type = #tpu.core_type<tc>, window_params = [{transform_indices = @transform_0, window_bounds = array<i64: 16, 64>}, {pipeline_mode = #tpu.pipeline_mode<synchronous>, transform_indices = @transform_1, window_bounds = array<i64: 64, 256>}, {pipeline_mode = #tpu.pipeline_mode<synchronous>, transform_indices = @transform_2, window_bounds = array<i64: 1, 256>}, {pipeline_mode = #tpu.pipeline_mode<synchronous>, transform_indices = @transform_3, window_bounds = array<i64: 256, 128>}, {pipeline_mode = #tpu.pipeline_mode<synchronous>, transform_indices = @transform_4, window_bounds = array<i64: 1, 128>}, {pipeline_mode = #tpu.pipeline_mode<synchronous>, transform_indices = @transform_5, window_bounds = array<i64: 128, 64>}, {pipeline_mode = #tpu.pipeline_mode<synchronous>, transform_indices = @transform_6, window_bounds = array<i64: 1, 64>}, {pipeline_mode = #tpu.pipeline_mode<synchronous>, transform_indices = @transform_7, window_bounds = array<i64: 1, 64>}, {transform_indices = @transform_8, window_bounds = array<i64: 1, 1>}, {transform_indices = @transform_9, window_bounds = array<i64: 1, 16>}, {transform_indices = @transform_10, window_bounds = array<i64: 16, 256>}]} {
    %c0 = arith.constant 0 : index
    %c0_0 = arith.constant 0 : index
    %0 = vector.load %arg1[%c0, %c0_0] : memref<16x64xf32, #tpu.memory_space<vmem>>, vector<16x64xf32>
    %1 = arith.truncf %0 : vector<16x64xf32> to vector<16x64xbf16>
    %c0_1 = arith.constant 0 : index
    %c0_2 = arith.constant 0 : index
    %2 = vector.load %arg2[%c0_1, %c0_2] : memref<64x256xbf16, #tpu.memory_space<vmem>>, vector<64x256xbf16>
    %cst = arith.constant dense<0.000000e+00> : vector<16x256xf32>
    %3 = tpu.matmul %1, %2, %cst {dimension_numbers = #tpu.dot_dimension_numbers<[1], [0], [0], [1], [0, 0, 1, 1], [], []>} : vector<16x64xbf16>, vector<64x256xbf16>, vector<16x256xf32> -> vector<16x256xf32>
    %c0_3 = arith.constant 0 : index
    %c0_4 = arith.constant 0 : index
    %4 = vector.load %arg3[%c0_3, %c0_4] : memref<1x256xf32, #tpu.memory_space<vmem>>, vector<1x256xf32>
    %5 = vector.broadcast %4 : vector<1x256xf32> to vector<16x256xf32>
    %6 = arith.addf %3, %5 : vector<16x256xf32>
    %cst_5 = arith.constant 0.000000e+00 : f32
    %7 = vector.broadcast %cst_5 : f32 to vector<16x256xf32>
    %8 = arith.cmpf ogt, %6, %7 : vector<16x256xf32>
    %cst_6 = arith.constant 2.000000e-01 : f32
    %9 = vector.broadcast %cst_6 : f32 to vector<16x256xf32>
    %10 = arith.mulf %9, %6 : vector<16x256xf32>
    %11 = arith.select %8, %6, %10 : vector<16x256xi1>, vector<16x256xf32>
    %c0_7 = arith.constant 0 : index
    %c0_8 = arith.constant 0 : index
    %12 = vector.load %arg11[%c0_7, %c0_8] : memref<16x256xf32, #tpu.memory_space<vmem>>, vector<16x256xf32>
    tpu.vector_store %arg11[%c0_7, %c0_8], %11 {strides = array<i32>} : memref<16x256xf32, #tpu.memory_space<vmem>>, vector<16x256xf32>,
    %13 = arith.truncf %11 : vector<16x256xf32> to vector<16x256xbf16>
    %c0_9 = arith.constant 0 : index
    %c0_10 = arith.constant 0 : index
    %14 = vector.load %arg4[%c0_9, %c0_10] : memref<256x128xbf16, #tpu.memory_space<vmem>>, vector<256x128xbf16>
    %cst_11 = arith.constant dense<0.000000e+00> : vector<16x128xf32>
    %15 = tpu.matmul %13, %14, %cst_11 {dimension_numbers = #tpu.dot_dimension_numbers<[1], [0], [0], [1], [0, 0, 1, 1], [], []>} : vector<16x256xbf16>, vector<256x128xbf16>, vector<16x128xf32> -> vector<16x128xf32>
    %c0_12 = arith.constant 0 : index
    %c0_13 = arith.constant 0 : index
    %16 = vector.load %arg5[%c0_12, %c0_13] : memref<1x128xf32, #tpu.memory_space<vmem>>, vector<1x128xf32>
    %17 = vector.broadcast %16 : vector<1x128xf32> to vector<16x128xf32>
    %18 = arith.addf %15, %17 : vector<16x128xf32>
    %cst_14 = arith.constant 0.000000e+00 : f32
    %19 = vector.broadcast %cst_14 : f32 to vector<16x128xf32>
    %20 = arith.cmpf ogt, %18, %19 : vector<16x128xf32>
    %cst_15 = arith.constant 2.000000e-01 : f32
    %21 = vector.broadcast %cst_15 : f32 to vector<16x128xf32>
    %22 = arith.mulf %21, %18 : vector<16x128xf32>
    %23 = arith.select %20, %18, %22 : vector<16x128xi1>, vector<16x128xf32>
    %24 = arith.truncf %23 : vector<16x128xf32> to vector<16x128xbf16>
    %c0_16 = arith.constant 0 : index
    %c0_17 = arith.constant 0 : index
    %25 = vector.load %arg6[%c0_16, %c0_17] : memref<128x64xbf16, #tpu.memory_space<vmem>>, vector<128x64xbf16>
    %cst_18 = arith.constant dense<0.000000e+00> : vector<16x64xf32>
    %26 = tpu.matmul %24, %25, %cst_18 {dimension_numbers = #tpu.dot_dimension_numbers<[1], [0], [0], [1], [0, 0, 1, 1], [], []>} : vector<16x128xbf16>, vector<128x64xbf16>, vector<16x64xf32> -> vector<16x64xf32>
    %c0_19 = arith.constant 0 : index
    %c0_20 = arith.constant 0 : index
    %27 = vector.load %arg7[%c0_19, %c0_20] : memref<1x64xf32, #tpu.memory_space<vmem>>, vector<1x64xf32>
    %28 = vector.broadcast %27 : vector<1x64xf32> to vector<16x64xf32>
    %29 = arith.addf %26, %28 : vector<16x64xf32>
    %cst_21 = arith.constant 0.000000e+00 : f32
    %30 = vector.broadcast %cst_21 : f32 to vector<16x64xf32>
    %31 = arith.cmpf ogt, %29, %30 : vector<16x64xf32>
    %cst_22 = arith.constant 2.000000e-01 : f32
    %32 = vector.broadcast %cst_22 : f32 to vector<16x64xf32>
    %33 = arith.mulf %32, %29 : vector<16x64xf32>
    %34 = arith.select %31, %29, %33 : vector<16x64xi1>, vector<16x64xf32>
    %c0_23 = arith.constant 0 : index
    %c0_24 = arith.constant 0 : index
    %35 = vector.load %arg8[%c0_23, %c0_24] : memref<1x64xbf16, #tpu.memory_space<vmem>>, vector<1x64xbf16>
    %36 = arith.truncf %34 : vector<16x64xf32> to vector<16x64xbf16>
    %cst_25 = arith.constant dense<0.000000e+00> : vector<1x16xf32>
    %37 = tpu.matmul %35, %36, %cst_25 {dimension_numbers = #tpu.dot_dimension_numbers<[1], [1], [0], [0], [0, 0, 1, 0], [], []>} : vector<1x64xbf16>, vector<16x64xbf16>, vector<1x16xf32> -> vector<1x16xf32>
    %c0_26 = arith.constant 0 : index
    %c0_27 = arith.constant 0 : index
    %38 = memref.load %arg9[%c0_26, %c0_27] : memref<1x1xf32, #tpu.memory_space<smem>>
    %39 = vector.broadcast %38 : f32 to vector<1x16xf32>
    %40 = arith.addf %37, %39 : vector<1x16xf32>
    %cst_28 = arith.constant 0.000000e+00 : f32
    %41 = vector.broadcast %cst_28 : f32 to vector<1x16xf32>
    %42 = arith.subf %41, %40 : vector<1x16xf32>
    %43 = math.exp %42 : vector<1x16xf32>
    %cst_29 = arith.constant 1.000000e+00 : f32
    %44 = vector.broadcast %cst_29 : f32 to vector<1x16xf32>
    %45 = arith.addf %44, %43 : vector<1x16xf32>
    %46 = tpu.reciprocal %45 {approx = true} : vector<1x16xf32> -> vector<1x16xf32>
    %c0_30 = arith.constant 0 : index
    %c0_31 = arith.constant 0 : index
    %47 = vector.load %arg10[%c0_30, %c0_31] : memref<1x16xf32, #tpu.memory_space<vmem>>, vector<1x16xf32>
    tpu.vector_store %arg10[%c0_30, %c0_31], %46 {strides = array<i32>} : memref<1x16xf32, #tpu.memory_space<vmem>>, vector<1x16xf32>,
    return
  }
  func.func @transform_0(%arg0: i32) -> (i32, i32) {
    %c0_i32 = arith.constant 0 : i32
    %c0_i32_0 = arith.constant 0 : i32
    return %arg0, %c0_i32 : i32, i32
  }
  func.func @transform_1(%arg0: i32) -> (i32, i32) {
    %c0_i32 = arith.constant 0 : i32
    %c0_i32_0 = arith.constant 0 : i32
    %c0_i32_1 = arith.constant 0 : i32
    return %c0_i32, %c0_i32_0 : i32, i32
  }
  func.func @transform_2(%arg0: i32) -> (i32, i32) {
    %c0_i32 = arith.constant 0 : i32
    %c0_i32_0 = arith.constant 0 : i32
    %c0_i32_1 = arith.constant 0 : i32
    return %c0_i32, %c0_i32_0 : i32, i32
  }
  func.func @transform_3(%arg0: i32) -> (i32, i32) {
    %c0_i32 = arith.constant 0 : i32
    %c0_i32_0 = arith.constant 0 : i32
    %c0_i32_1 = arith.constant 0 : i32
    return %c0_i32, %c0_i32_0 : i32, i32
  }
  func.func @transform_4(%arg0: i32) -> (i32, i32) {
    %c0_i32 = arith.constant 0 : i32
    %c0_i32_0 = arith.constant 0 : i32
    %c0_i32_1 = arith.constant 0 : i32
    return %c0_i32, %c0_i32_0 : i32, i32
  }
  func.func @transform_5(%arg0: i32) -> (i32, i32) {
    %c0_i32 = arith.constant 0 : i32
    %c0_i32_0 = arith.constant 0 : i32
    %c0_i32_1 = arith.constant 0 : i32
    return %c0_i32, %c0_i32_0 : i32, i32
  }
  func.func @transform_6(%arg0: i32) -> (i32, i32) {
    %c0_i32 = arith.constant 0 : i32
    %c0_i32_0 = arith.constant 0 : i32
    %c0_i32_1 = arith.constant 0 : i32
    return %c0_i32, %c0_i32_0 : i32, i32
  }
  func.func @transform_7(%arg0: i32) -> (i32, i32) {
    %c0_i32 = arith.constant 0 : i32
    %c0_i32_0 = arith.constant 0 : i32
    %c0_i32_1 = arith.constant 0 : i32
    return %c0_i32, %c0_i32_0 : i32, i32
  }
  func.func @transform_8(%arg0: i32) -> (i32, i32) {
    %c0_i32 = arith.constant 0 : i32
    %c0_i32_0 = arith.constant 0 : i32
    %c0_i32_1 = arith.constant 0 : i32
    return %c0_i32, %c0_i32_0 : i32, i32
  }
  func.func @transform_9(%arg0: i32) -> (i32, i32) {
    %c0_i32 = arith.constant 0 : i32
    %c0_i32_0 = arith.constant 0 : i32
    return %c0_i32, %arg0 : i32, i32
  }
  func.func @transform_10(%arg0: i32) -> (i32, i32) {
    %c0_i32 = arith.constant 0 : i32
    %c0_i32_0 = arith.constant 0 : i32
    return %arg0, %c0_i32 : i32, i32
  }
}

</mosaic_0001>

<bundles_post_ra>
// kernel: tpu_custom_call.1
= control target key start
LH: loop header
LB: loop body
LE: loop exit
PB: predicated region body
PF: predicated region fallthrough
CT: control target
= control target key end

     0   :  { %17 = vsyncpa [#allocation4], 0  ;;  %s959_s0 = inlined_call_operand.vmem [shape: f32[16,64], index: 0, kind: input, shape index: {}]   ;;  %s960_s1 = inlined_call_operand.vmem [shape: bf16[64,256], index: 1, kind: input, shape index: {}]   ;;  %s961_s2 = inlined_call_operand.vmem [shape: f32[1,256], index: 2, kind: input, shape index: {}]   ;;  %s962_s3 = inlined_call_operand.hbm [shape: bf16[256,128], index: 3, kind: input, shape index: {}]   ;;  %s963_s4 = inlined_call_operand.vmem [shape: f32[1,128], index: 4, kind: input, shape index: {}]   ;;  %s964_s5 = inlined_call_operand.vmem [shape: bf16[128,64], index: 5, kind: input, shape index: {}]   ;;  %s965_s6 = inlined_call_operand.vmem [shape: f32[1,64], index: 6, kind: input, shape index: {}]   ;;  %s966_s7 = inlined_call_operand.vmem [shape: bf16[1,64], index: 7, kind: input, shape index: {}]   ;;  %s967_s8 = inlined_call_operand.<no memory space> [shape: f32[1,1], index: 8, kind: input, shape index: {}]   ;;  %s968_s9 = inlined_call_operand.hbm [shape: f32[1,16], index: 9, kind: output, shape index: {0}]   ;;  %s969_s10 = inlined_call_operand.hbm [shape: f32[16,256], index: 10, kind: output, shape index: {1}]  }
   0x1   :  { %18 = vsyncpa [#allocation5], 0 }
   0x2   :  { %19 = vsyncpa [#allocation8], 0  ;;  %s786_s13 = smov [#allocation3]   ;;  %s714_s17 = scalar_lea.hbm %s962_s3, 2048 }
   0x3   :  { %s31_s14 = sshll.u32 %s786_s13, 4  ;;  %p715_p0 = scmp.ne.s32.totalorder %s962_s3, %s714_s17  ;;  %s32_s14 = int_to_ptr.vmem [resolvable:$true] %s31_s14 }
   0x4   :  { %p718_p1 = scmp.lt.u32.totalorder %s714_s17, %s962_s3 }
   0x6   :  { %p720_p2 = pnand %p718_p1, %p715_p0 }
   0x8   :  { %723 = shalt.err (!%p720_p2)
}
   0x9   :  { %s724_s22 = scalar_lea.vmem %s32_s14, 2048  ;;  %p729_p4 = scmp.lt.s32.totalorder %s32_s14, %s32_s14 }
   0xa   :  { %p725_p3 = scmp.ne.s32.totalorder %s32_s14, %s724_s22  ;;  %p730_p5 = scmp.lt.s32.totalorder %s724_s22, %s724_s22 }
   0xc   :  { %p731_p6 = por %p730_p5, %p729_p4 }
   0xe   :  { %p732_p7 = pnand %p731_p6, %p725_p3 }
  0x10   :  { %735 = shalt.err (!%p732_p7)
}
  0x11   :  { %s787_s23 = smov 64   ;;  %s788_s24 = smov 4  }
  0x12   :  { %37 = dma.hbm_to_vmem [thread:$0]  %s962_s3, 2048, %s32_s14, [#allocation4], %s787_s23, %s787_s23, %s788_s24  }
  0x13   :  { %780 = dma.done.wait [#allocation4], 2048  }
  0x14   :  { %781 = vsyncadd [#allocation4], 4294965248  ;;  %v789_v0 = vmov 0   ;;  %v674_v1 = vld [vmem:[%s960_s1 + $0x4] ss:$8 sps:$4 sm:$0xff]   ;;  %v690_v14 = vld [vmem:[#allocation3 + $0x50] sm:$0xff]   ;;  %v65_v34 = vlaneseq }
  0x15   :  { %151 = vmatprep.mubr.bf16.mxu0 %v789_v0  ;;  %v676_v2 = vld [vmem:[%s960_s1] ss:$8 sps:$4 sm:$0xff]   ;;  %119 = vmatprep.subr.bf16.mxu0 %v674_v1  ;;  %v677_v3 = vld [vmem:[%s960_s1 + $0x14] ss:$8 sps:$4 sm:$0xff]   ;;  %v679_v4 = vld [vmem:[%s960_s1 + $0x10] ss:$8 sps:$4 sm:$0xff]  }
  0x16   :  { %120 = vmatpush1.bf16.msra.mxu0 %v676_v2  ;;  %v680_v5 = vld [vmem:[%s960_s1 + $0x24] ss:$8 sps:$4 sm:$0xff]   ;;  %v682_v6 = vld [vmem:[%s960_s1 + $0x20] ss:$8 sps:$4 sm:$0xff]   ;;  %v683_v7 = vld [vmem:[%s960_s1 + $0x34] ss:$8 sps:$4 sm:$0xff]  }
  0x17   :  { %121 = vmatprep.subr.bf16.mxu0 %v677_v3  ;;  %v686_v8 = vld [vmem:[#allocation3 + $0x40] sm:$0xff]   ;;  %v688_v10 = vld [vmem:[#allocation3 + $0x48] sm:$0xff]   ;;  %v685_v11 = vld [vmem:[%s960_s1 + $0x30] ss:$8 sps:$4 sm:$0xff]   ;;  %vm115_vm0 = vcmask 523264   ;;  %v790_v29 = vmov 0.0  }
  0x18   :  { %v687_v9 = vld [vmem:[#allocation3] sm:$0xff]   ;;  %605 = vmatprep.subr.bf16.mxu1 %v686_v8  ;;  %v689_v13 = vld [vmem:[#allocation3 + $0x8] sm:$0xff]   ;;  %v691_v16 = vld [vmem:[#allocation3 + $0x10] sm:$0xff]   ;;  %v66_v35 = vshrl.u32 %v65_v34, 7  ;;  %vm791_vm5 = vmmov 0  }
  0x19   :  { %v52_v12 = vld [vmem:[%s959_s0] sm:$0xff]  ;;  %606 = vmatpush3.bf16.msra.mxu1 %v687_v9  ;;  %v53_v15 = vld [vmem:[%s959_s0 + $0x8] sm:$0xff]  ;;  %v692_v18 = vld [vmem:[#allocation3 + $0x58] sm:$0xff]  }
  0x1a   :  { %122 = vmatpush1.bf16.msra.mxu0 %v679_v4  ;;  %607 = vmatprep.subr.bf16.mxu1 %v688_v10  ;;  %v54_v17 = vpack.c.bf16 %v53_v15, %v52_v12  ;;  %v693_v19 = vld [vmem:[#allocation3 + $0x18] sm:$0xff]   ;;  %v694_v20 = vld [vmem:[#allocation3 + $0x60] sm:$0xff]   ;;  %v696_v22 = vld [vmem:[#allocation3 + $0x68] sm:$0xff]   ;;  %v67_v36 = vsub.s32 0, %v66_v35  ;;  %v71_v38 = vsub.s32 1, %v66_v35 }
  0x1b   :  { %123 = vmatprep.subr.bf16.mxu0 %v680_v5  ;;  %v695_v21 = vld [vmem:[#allocation3 + $0x20] sm:$0xff]   ;;  %v697_v23 = vld [vmem:[#allocation3 + $0x28] sm:$0xff]   ;;  %v698_v24 = vld [vmem:[#allocation3 + $0x70] sm:$0xff]  }
  0x1c   :  { %v699_v25 = vld [vmem:[#allocation3 + $0x30] sm:$0xff]   ;;  %v700_v26 = vld [vmem:[#allocation3 + $0x78] sm:$0xff]   ;;  %v702_v28 = vld [vmem:[%s964_s5] sm:$0xff]  }
  0x1d   :  { %608 = vmatpush3.bf16.msra.mxu1 %v689_v13  ;;  %v701_v27 = vld [vmem:[#allocation3 + $0x38] sm:$0xff]   ;;  %v703_v30 = vld [vmem:[%s964_s5 + $0x8] sm:$0xff]   ;;  %v704_v31 = vld [vmem:[%s964_s5 + $0x10] sm:$0xff]  }
  0x1e   :  { %124 = vmatpush1.bf16.msra.mxu0 %v682_v6  ;;  %609 = vmatprep.subr.bf16.mxu1 %v690_v14  ;;  %v705_v32 = vld [vmem:[%s964_s5 + $0x18] sm:$0xff]   ;;  %v706_v33 = vld [vmem:[%s964_s5 + $0x20] sm:$0xff]   ;;  %v707_v59 = vld [vmem:[%s964_s5 + $0x28] sm:$0xff]  }
  0x1f   :  { %125 = vmatprep.subr.bf16.mxu0 %v683_v7  ;;  %v63_v37 = vld [vmem:[%s961_s2] sm:$0x3]  ;;  %v708_v60 = vld [vmem:[%s964_s5 + $0x30] sm:$0xff]   ;;  %v709_v61 = vld [vmem:[%s964_s5 + $0x38] sm:$0xff]  }
  0x20   :  { %v68_v39 = vrot.slane %v63_v37, %v67_v36  ;;  %v72_v40 = vrot.slane %v63_v37, %v71_v38  ;;  %v578_v63 = vld [vmem:[%s963_s4] ss:$0 sm:$0xff] }
  0x21   :  { %610 = vmatpush3.bf16.msra.mxu1 %v691_v16  ;;  %v595_v12 = vld [vmem:[%s965_s6] ss:$0 sm:$0xff]  ;;  %s792_s6 = smov [#allocation7]  }
  0x22   :  { %126 = vmatpush1.bf16.msra.mxu0 %v685_v11  ;;  %611 = vmatprep.subr.bf16.mxu1 %v692_v18  ;;  %s553_s24 = sshll.u32 %s792_s6, 4  ;;  %s554_s24 = int_to_ptr.vmem [resolvable:$true] %s553_s24 }
  0x23   :  { %638 = vmatprep.subr.bf16.mxu0 %v790_v29  ;;  %s736_s25 = scalar_lea.vmem %s554_s24, 512  ;;  %p741_p9 = scmp.lt.s32.totalorder %s554_s24, %s554_s24 }
  0x24   :  { %p737_p8 = scmp.ne.s32.totalorder %s554_s24, %s736_s25  ;;  %p742_p10 = scmp.lt.s32.totalorder %s736_s25, %s736_s25 }
  0x25   :  { %577 = vmatmul.mubr.msk.bf16.vlgmr.msra.gmra.mrb[0].mxu0 %vm115_vm0, %v54_v17  ;;  %612 = vmatpush3.bf16.msra.mxu1 %v693_v19 }
  0x26   :  { %613 = vmatprep.subr.bf16.mxu1 %v694_v20  ;;  %639 = vmatpush3.bf16.msra.mxu0 %v702_v28  ;;  %p743_p11 = por %p742_p10, %p741_p9 }
  0x27   :  { %640 = vmatprep.subr.bf16.mxu0 %v790_v29  ;;  %654 = vmatprep.mubr.msk.bf16.mxu0 %vm791_vm5, %v790_v29 }
  0x28   :  { %p744_p12 = pnand %p743_p11, %p737_p8 }
  0x29   :  { %614 = vmatpush3.bf16.msra.mxu1 %v695_v21 }
  0x2a   :  { %615 = vmatprep.subr.bf16.mxu1 %v696_v22  ;;  %641 = vmatpush3.bf16.msra.mxu0 %v703_v30 }
  0x2b   :  { %642 = vmatprep.subr.bf16.mxu0 %v790_v29 }
  0x2d   :  { %616 = vmatpush3.bf16.msra.mxu1 %v697_v23 }
  0x2e   :  { %617 = vmatprep.subr.bf16.mxu1 %v698_v24  ;;  %643 = vmatpush3.bf16.msra.mxu0 %v704_v31 }
  0x2f   :  { %644 = vmatprep.subr.bf16.mxu0 %v790_v29 }
  0x31   :  { %618 = vmatpush3.bf16.msra.mxu1 %v699_v25  ;;  %v481_v25 = vld [vmem:[%s966_s7] sm:$0x1] }
  0x32   :  { %619 = vmatprep.subr.bf16.mxu1 %v700_v26  ;;  %645 = vmatpush3.bf16.msra.mxu0 %v705_v32 }
  0x33   :  { %646 = vmatprep.subr.bf16.mxu0 %v790_v29 }
  0x35   :  { %620 = vmatpush3.bf16.msra.mxu1 %v701_v27 }
  0x36   :  { %658 = vmatprep.subr.bf16.mxu1 %v790_v29  ;;  %647 = vmatpush3.bf16.msra.mxu0 %v706_v33 }
  0x37   :  { %648 = vmatprep.subr.bf16.mxu0 %v790_v29 }
  0x3a   :  { %649 = vmatpush3.bf16.msra.mxu0 %v707_v59 }
  0x3b   :  { %650 = vmatprep.subr.bf16.mxu0 %v790_v29 }
  0x3e   :  { %651 = vmatpush3.bf16.msra.mxu0 %v708_v60 }
  0x3f   :  { %652 = vmatprep.subr.bf16.mxu0 %v790_v29 }
  0x42   :  { %653 = vmatpush3.bf16.msra.mxu0 %v709_v61 }
  0xf8   :  { %v153_v41 = vpop.f32.mrb[0].mxu0 }
  0xf9   :  { %v154_v42 = vadd.f32 %v153_v41, %v68_v39  ;;  %v155_v43 = vpop.f32.mrb[1].mxu0 }
  0xfa   :  { %v156_v44 = vadd.f32 %v155_v43, %v72_v40  ;;  %v157_v45 = vpop.f32.mrb[2].mxu0 }
  0xfb   :  { %vm162_vm1 = vcmp.gt.f32.partialorder %v154_v42, 0.0  ;;  %v166_v46 = vmul.f32 0.2, %v154_v42  ;;  %v158_v47 = vadd.f32 %v157_v45, %v68_v39  ;;  %v159_v48 = vpop.f32.mrb[3].mxu0 }
  0xfc   :  { %v167_v49 = vmul.f32 0.2, %v156_v44  ;;  %v160_v50 = vadd.f32 %v159_v48, %v72_v40  ;;  %vm163_vm2 = vcmp.gt.f32.partialorder %v156_v44, 0.0 }
  0xfd   :  { %vm164_vm3 = vcmp.gt.f32.partialorder %v158_v47, 0.0  ;;  %v168_v51 = vmul.f32 0.2, %v158_v47  ;;  %v170_v52 = vsel %vm162_vm1, %v154_v42, %v166_v46 }
  0xfe   :  { %v169_v53 = vmul.f32 0.2, %v160_v50  ;;  %vm165_vm4 = vcmp.gt.f32.partialorder %v160_v50, 0.0  ;;  %v171_v54 = vsel %vm163_vm2, %v156_v44, %v167_v49  ;;  %174 = vst [vmem:[#allocation7] sm:$0xff] %v170_v52 }
  0xff   :  { %175 = vst [vmem:[#allocation7 + $0x8] sm:$0xff] %v171_v54  ;;  %v172_v55 = vsel %vm164_vm3, %v158_v47, %v168_v51 }
 0x100   :  { %v173_v56 = vsel %vm165_vm4, %v160_v50, %v169_v53  ;;  %176 = vst [vmem:[#allocation7 + $0x10] sm:$0xff] %v172_v55  ;;  %v178_v57 = vpack.c.bf16 %v172_v55, %v170_v52 }
 0x101   :  { %177 = vst [vmem:[#allocation7 + $0x18] sm:$0xff] %v173_v56  ;;  %v179_v58 = vpack.c.bf16 %v173_v56, %v171_v54 }
 0x103   :  { %347 = vmatprep.mubr.bf16.mxu1 %v179_v58 }
 0x104   :  { %348 = vmatmul.mubr.bf16.vlgmr.msra.gmra.mrb[0].mxu1 %v178_v57 }
 0x105   :  { %660 = vmatprep.mubr.msk.bf16.mxu1 %vm791_vm5, %v790_v29 }
 0x1d7   :  { %v621_v62 = vpop.f32.mrb[0].mxu1 }
 0x1d8   :  { %v622_v0 = vpop.f32.mrb[1].mxu1 }
 0x1d9   :  { %v623_v1 = vadd.f32 %v622_v0, %v621_v62  ;;  %v624_v2 = vpop.f32.mrb[2].mxu1 }
 0x1da   :  { %v625_v3 = vpop.f32.mrb[3].mxu1 }
 0x1db   :  { %v350_v4 = vadd.f32 %v623_v1, %v578_v63  ;;  %v626_v5 = vadd.f32 %v625_v3, %v624_v2 }
 0x1dd   :  { %v358_v6 = vmul.f32 0.2, %v350_v4  ;;  %v353_v7 = vadd.f32 %v626_v5, %v578_v63  ;;  %vm356_vm6 = vcmp.gt.f32.partialorder %v350_v4, 0.0 }
 0x1df   :  { %vm357_vm7 = vcmp.gt.f32.partialorder %v353_v7, 0.0  ;;  %v359_v8 = vmul.f32 0.2, %v353_v7  ;;  %v360_v9 = vsel %vm356_vm6, %v350_v4, %v358_v6 }
 0x1e1   :  { %v361_v10 = vsel %vm357_vm7, %v353_v7, %v359_v8 }
 0x1e2   :  { %v362_v11 = vpack.c.bf16 %v361_v10, %v360_v9 }
 0x1e4   :  { %655 = vmatmul.mubr.bf16.vlgmr.msra.gmra.mrb[4].mxu0 %v362_v11 }
 0x2b7   :  { %v468_v13 = vpop.f32.mrb[4].mxu0 }
 0x2b8   :  { %v469_v14 = vadd.f32 %v595_v12, %v468_v13  ;;  %v656_v15 = vpop.f32.mrb[5].mxu0 }
 0x2b9   :  { %v471_v16 = vpop.f32.mrb[6].mxu0 }
 0x2ba   :  { %v477_v17 = vmul.f32 0.2, %v469_v14  ;;  %v472_v18 = vadd.f32 %v595_v12, %v471_v16  ;;  %v657_v19 = vpop.f32.mrb[7].mxu0  ;;  %vm475_vm8 = vcmp.gt.f32.partialorder %v469_v14, 0.0 }
 0x2bc   :  { %vm476_vm9 = vcmp.gt.f32.partialorder %v472_v18, 0.0  ;;  %v478_v20 = vmul.f32 0.2, %v472_v18  ;;  %v479_v21 = vsel %vm475_vm8, %v469_v14, %v477_v17 }
 0x2be   :  { %v480_v22 = vsel %vm476_vm9, %v472_v18, %v478_v20 }
 0x2bf   :  { %v482_v23 = vpack.c.bf16 %v480_v22, %v479_v21 }
 0x2c1   :  { %v489_v24 = vsel %vm115_vm0, %v482_v23, 0 }
 0x2c2   :  { %659 = vmatpush3.bf16.xpose.msra.mxu1 %v489_v24 }
 0x2c9   :  { %661 = vmatmul.mubr.msk.bf16.vlgmr.msra.gmra.mrb[4].mxu1 %vm115_vm0, %v481_v25 }
 0x2ca   :  { %747 = shalt.err (!%p744_p12)
}
 0x2cb   :  { %s748_s26 = scalar_lea.hbm %s969_s10, 512 }
 0x2cc   :  { %p749_p13 = scmp.ne.s32.totalorder %s969_s10, %s748_s26  ;;  %p752_p0 = scmp.lt.u32.totalorder %s748_s26, %s969_s10 }
 0x2ce   :  { %p754_p1 = pnand %p752_p0, %p749_p13 }
 0x2d0   :  { %757 = shalt.err (!%p754_p1)
}
 0x2d1   :  { %s793_s30 = smov 256   ;;  %s794_s11 = smov 16   ;;  %v484_v26 = vstv %s967_s8  ;;  %vm536_vm10 = vcmask 122880  }
 0x2d2   :  { %559 = dma.vmem_to_hbm [thread:$0]  %s554_s24, 512, %s969_s10, [#allocation8], %s793_s30, %s793_s30, %s794_s11  }
 0x2d3   :  { %s795_s2 = smov [#allocation6]  }
 0x2d4   :  { %s544_s15 = sshll.u32 %s795_s2, 4  ;;  %s545_s15 = int_to_ptr.vmem [resolvable:$true] %s544_s15 }
 0x2d5   :  { %s758_s10 = scalar_lea.vmem %s545_s15, 16  ;;  %s762_s8 = scalar_lea.vmem %s545_s15, 32 }
 0x2d6   :  { %p759_p2 = scmp.ne.s32.totalorder %s545_s15, %s758_s10  ;;  %p763_p3 = scmp.lt.s32.totalorder %s545_s15, %s545_s15 }
 0x2d7   :  { %p764_p4 = scmp.lt.s32.totalorder %s762_s8, %s758_s10 }
 0x2d9   :  { %p765_p5 = por %p764_p4, %p763_p3 }
 0x2db   :  { %p766_p6 = pnand %p765_p5, %p759_p2 }
 0x39c   :  { %v525_v27 = vpop.f32.mrb[4].mxu1 }
 0x39d   :  { %v526_v28 = vadd.f32 %v525_v27, %v484_v26  ;;  %v662_v29 = vpop.f32.mrb[5].mxu1 }
 0x39e   :  { %v528_v30 = vpop.f32.mrb[6].mxu1 }
 0x39f   :  { %v531_v31 = vsub.f32 0.0, %v526_v28  ;;  %v663_v32 = vpop.f32.mrb[7].mxu1 }
 0x3a1   :  { %v532_v33 = vmul.f32 1.442695, %v531_v31 }
 0x3a3   :  { %710 = vpow2.f32 %v532_v33 }
 0x3ad   :  { %v711_v34 = vpop.eup %710 }
 0x3ae   :  { %v534_v35 = vadd.f32 1.0, %v711_v34 }
 0x3b0   :  { %712 = vrcp.f32 %v534_v35 }
 0x3ba   :  { %v713_v36 = vpop.eup %712 }
 0x3bb   :  { %537 = vst.msk [vmem:[#allocation6] sm:$0x1] %vm536_vm10, %v713_v36 }
 0x3bc   :  { %769 = shalt.err (!%p766_p6)
}
 0x3bd   :  { %s770_s18 = scalar_lea.hbm %s968_s9, 16 }
 0x3be   :  { %p771_p7 = scmp.ne.s32.totalorder %s968_s9, %s770_s18  ;;  %p774_p8 = scmp.lt.u32.totalorder %s770_s18, %s968_s9 }
 0x3c0   :  { %p776_p9 = pnand %p774_p8, %p771_p7 }
 0x3c2   :  { %779 = shalt.err (!%p776_p9)
}
 0x3c3   :  { %547 = dma.vmem_to_hbm [thread:$0]  %s545_s15, 16, %s968_s9, [#allocation5]  }
 0x3c4   :  { %782 = dma.done.wait [#allocation5], 16  }
 0x3c5   :  { %783 = vsyncadd [#allocation5], 4294967280 }
 0x3c6   :  { %784 = dma.done.wait [#allocation8], 512  }
 0x3c7   :  { %785 = vsyncadd [#allocation8], 4294966784 }
 0x3c8   :  { %566 = vsyncpa [#allocation4], 1 }
 0x3c9   :  { %567 = vsyncpa [#allocation5], 1 }
 0x3ca   :  { %568 = vsyncpa [#allocation8], 1 }

</bundles_post_ra>
